<compile_context>
chip_gen: v7x
topology: tpu7x:2x2x1
jax: 0.10.0
libtpu: 0.0.40
codegen_flags: <defaults>
</compile_context>

<pallas_src>
import jax
import jax.numpy as jnp
from jax.experimental import pallas as pl
from jax.experimental.pallas import tpu as pltpu


NUM_LAYERS = 5
LANE = 128  # TPU lane width


def _round_up(x, m):
    return ((x + m - 1) // m) * m


def odefunc_kernel(x_ref, w_ref, o_ref):
    # x_ref: (TB, Dp) activation block (f32); w_ref: (5, Dp, Dp) packed bf16
    # weights, VMEM-resident across all grid steps; o_ref: (TB, Dp) output.
    h = x_ref[...].astype(jnp.float32)

    # 4 hidden layers: bf16 MXU matmul with f32 accumulation + ReLU on the
    # f32 accumulator (VPU f32 works on all of v5e/v6e/v7x).
    for layer in range(NUM_LAYERS - 1):
        h = jnp.dot(h.astype(jnp.bfloat16), w_ref[layer],
                    preferred_element_type=jnp.float32)
        h = jnp.maximum(h, 0.0)

    # Final layer: no activation.
    h = jnp.dot(h.astype(jnp.bfloat16), w_ref[NUM_LAYERS - 1],
                preferred_element_type=jnp.float32)

    o_ref[...] = h.astype(o_ref.dtype)


def pack_weights(weights, dtype=jnp.bfloat16):
    """Pack 5 (D, D) weights (already in (in, out) layout) into one
    (5, Dp, Dp) array, zero-padded so Dp is a multiple of 128 lanes, and cast
    to `dtype` (bf16 by default: MXU peak + half the VMEM/DMA of f32).

    The zero-padding is exact for this module (bias-free + ReLU(0)=0).
    """
    assert len(weights) == NUM_LAYERS
    d = weights[0].shape[0]
    dp = _round_up(d, LANE)
    w = jnp.stack(weights, axis=0)  # (5, D, D)
    if dp != d:
        w = jnp.pad(w, ((0, 0), (0, dp - d), (0, dp - d)))
    return w.astype(dtype)  # (5, Dp, Dp)


def _default_block_b(b_rows):
    """Pick a batch block: >=2 blocks if the device exposes multiple
    TensorCores (v7x), otherwise one big block (v5e/v6e). Multiple of 8 rows,
    capped at 1024."""
    b8 = _round_up(b_rows, 8)
    try:
        num_tc = int(getattr(jax.devices()[0], "num_cores", 1) or 1)
    except Exception:  # pragma: no cover - defensive
        num_tc = 1
    num_tc = max(1, num_tc)
    if num_tc > 1:
        blk = _round_up((b8 + num_tc - 1) // num_tc, 8)
    else:
        blk = b8
    return max(8, min(blk, 1024))


def odefunc_forward_padded(x_p, w_packed, *, block_b=None):
    """Forward pass on an already lane/sublane-padded activation tensor.

    x_p:      (Bp8, Dp) with Dp a multiple of 128 and Bp8 a multiple of 8.
    w_packed: (5, Dp, Dp) from pack_weights().
    Returns (Bp8, Dp); padded lanes/rows remain exactly zero-consistent, so an
    ODE-solver loop can keep activations in this layout between steps.
    """
    b_rows, dp = x_p.shape
    assert w_packed.shape == (NUM_LAYERS, dp, dp)
    assert dp % LANE == 0 and b_rows % 8 == 0

    if block_b is None:
        block_b = _default_block_b(b_rows)
    block_b = max(8, _round_up(int(block_b), 8))

    bp = _round_up(b_rows, block_b)
    if bp != b_rows:
        x_p = jnp.pad(x_p, ((0, bp - b_rows), (0, 0)))
    grid = (bp // block_b,)

    out_dtype = x_p.dtype

    # --- VMEM budget: resident weights (single-buffered) + double-buffered
    # activation in/out blocks + f32 intermediates, plus headroom.
    w_bytes = NUM_LAYERS * dp * dp * w_packed.dtype.itemsize
    x_bytes = 2 * block_b * dp * x_p.dtype.itemsize
    o_bytes = 2 * block_b * dp * jnp.dtype(out_dtype).itemsize
    h_bytes = 2 * block_b * dp * 4
    need = w_bytes + x_bytes + o_bytes + h_bytes + (2 << 20)
    vmem_limit = int(min(max(need, 32 << 20), 64 << 20))
    # TODO(synk): if NUM_LAYERS*Dp^2 weights exceed ~64 MiB (v7x physical VMEM),
    # add a layer-tiling grid axis instead of relying on full weight residency.

    flops = 2 * NUM_LAYERS * bp * dp * dp
    bytes_accessed = (bp * dp * x_p.dtype.itemsize
                      + bp * dp * jnp.dtype(out_dtype).itemsize
                      + NUM_LAYERS * dp * dp * w_packed.dtype.itemsize)
    cost = pl.CostEstimate(flops=int(flops), transcendentals=0,
                           bytes_accessed=int(bytes_accessed))

    def _call(weight_spec):
        return pl.pallas_call(
            odefunc_kernel,
            out_shape=jax.ShapeDtypeStruct((bp, dp), out_dtype),
            grid=grid,
            in_specs=[
                # Activations: stream one (block_b, Dp) row-block per grid step.
                pl.BlockSpec((block_b, dp), lambda i: (i, 0)),
                # Packed weights: constant block index -> one DMA, VMEM-resident.
                weight_spec,
            ],
            out_specs=pl.BlockSpec((block_b, dp), lambda i: (i, 0)),
            compiler_params=pltpu.CompilerParams(
                dimension_semantics=("parallel",),
                vmem_limit_bytes=vmem_limit,
            ),
            cost_estimate=cost,
        )(x_p, w_packed)

    try:
        # Single-buffer the constant weight operand: halves its VMEM footprint.
        out = _call(pl.BlockSpec((NUM_LAYERS, dp, dp), lambda i: (0, 0, 0),
                                 pipeline_mode=pl.Buffered(1)))
    except Exception:
        # Fallback for jax versions that reject Buffered(1): default pipelining.
        out = _call(pl.BlockSpec((NUM_LAYERS, dp, dp), lambda i: (0, 0, 0)))

    return out[:b_rows]


def odefunc_forward(t, x, w_packed, *, block_b=None):
    """ODEfunc.forward(t, x). `t` is unused, exactly as in the PyTorch module.

    x:        (B, D) float32
    w_packed: (5, Dp, Dp) bf16 from pack_weights()
    """
    del t  # unused, matches the reference module
    b, d = x.shape
    dp = w_packed.shape[1]
    assert w_packed.shape == (NUM_LAYERS, dp, dp) and dp >= d

    # Pad features to the lane width and batch to a sublane multiple (exact:
    # bias-free + ReLU(0)=0 keeps padded lanes at zero).
    bp8 = _round_up(b, 8)
    x_p = jnp.pad(x, ((0, bp8 - b), (0, dp - d)))

    out = odefunc_forward_padded(x_p, w_packed, block_b=block_b)

    # Drop batch/lane padding.  For a real ODE-solver loop, call
    # odefunc_forward_padded directly and keep x in the padded layout between
    # steps (and, longer term, fuse solver steps into one pallas_call).
    return out[:b, :d]


def init_weights(key, dim, num_layers=NUM_LAYERS):
    """Deterministic init mimicking nn.Linear's default kaiming-uniform
    (U(-1/sqrt(in_features), 1/sqrt(in_features))), bias=False."""
    keys = jax.random.split(key, num_layers)
    bound = 1.0 / jnp.sqrt(jnp.float32(dim))
    ws = []
    for k in keys:
        # PyTorch weight is (out, in); we store its transpose (in, out).
        w_pt = jax.random.uniform(k, (dim, dim), jnp.float32, -bound, bound)
        ws.append(w_pt.T)
    return tuple(ws)


def odefunc_reference(t, x, weights, *, compute_dtype=jnp.bfloat16):
    """Plain-JAX reference.  With compute_dtype=bf16 it mirrors the kernel's
    bf16-operand / f32-accumulation matmuls; with f32 it is the exact module."""
    del t
    h = x.astype(jnp.float32)
    for i, w in enumerate(weights):
        h = jnp.dot(h.astype(compute_dtype), w.astype(compute_dtype),
                    preferred_element_type=jnp.float32)
        if i < len(weights) - 1:
            h = jnp.maximum(h, 0.0)
    return h


if __name__ == "__main__":
    B, D = 64, 32  # small shapes: batch=64, hidden dim=32

    key = jax.random.PRNGKey(0)
    kx, kw = jax.random.split(key)
    x = jax.random.normal(kx, (B, D), jnp.float32)
    t = jnp.float32(0.0)  # unused by the module
    weights = init_weights(kw, D)
    w_packed = pack_weights(weights)  # one-time host-side pack + lane pad + bf16

    # Default (chip-aware) batch blocking.
    out = odefunc_forward(t, x, w_packed)
    out = jax.block_until_ready(out)

    # Also exercise a multi-step batch grid explicitly (4 blocks of 16 rows).
    out_multi = odefunc_forward(t, x, w_packed, block_b=16)
    out_multi = jax.block_until_ready(out_multi)

    ref_bf16 = odefunc_reference(t, x, weights)                       # mirrors kernel math
    ref_f32 = odefunc_reference(t, x, weights, compute_dtype=jnp.float32)  # exact module

    assert out.shape == (B, D)
    assert jnp.allclose(out, ref_bf16, atol=1e-2, rtol=1e-2)
    assert jnp.allclose(out, ref_f32, atol=3e-2, rtol=3e-2)
    assert jnp.allclose(out_multi, ref_bf16, atol=1e-2, rtol=1e-2)

    print("KERNEL_OK")
</pallas_src>

<mosaic_0001>
module attributes {stable_mosaic.version = 11 : i64} {
  func.func @odefunc_kernel(%arg0: i32, %arg1: memref<64x128xf32, #tpu.memory_space<vmem>>, %arg2: memref<5x128x128xbf16, #tpu.memory_space<vmem>>, %arg3: memref<64x128xf32, #tpu.memory_space<vmem>>) attributes {dimension_semantics = [#tpu.dimension_semantics<parallel>], iteration_bounds = array<i64: 1>, scalar_prefetch = 0 : i64, scratch_operands = 0 : i64, tpu.core_type = #tpu.core_type<tc>, window_params = [{transform_indices = @transform_0, window_bounds = array<i64: 64, 128>}, {pipeline_mode = #tpu.pipeline_mode<synchronous>, transform_indices = @transform_1, window_bounds = array<i64: 5, 128, 128>}, {transform_indices = @transform_2, window_bounds = array<i64: 64, 128>}]} {
    %c0 = arith.constant 0 : index
    %c0_0 = arith.constant 0 : index
    %0 = vector.load %arg1[%c0, %c0_0] : memref<64x128xf32, #tpu.memory_space<vmem>>, vector<64x128xf32>
    %1 = arith.truncf %0 : vector<64x128xf32> to vector<64x128xbf16>
    %c0_1 = arith.constant 0 : index
    %c0_2 = arith.constant 0 : index
    %c0_3 = arith.constant 0 : index
    %2 = vector.load %arg2[%c0_1, %c0_2, %c0_3] : memref<5x128x128xbf16, #tpu.memory_space<vmem>>, vector<1x128x128xbf16>
    %3 = vector.shape_cast %2 : vector<1x128x128xbf16> to vector<128x128xbf16>
    %cst = arith.constant dense<0.000000e+00> : vector<64x128xf32>
    %4 = tpu.matmul %1, %3, %cst {dimension_numbers = #tpu.dot_dimension_numbers<[1], [0], [0], [1], [0, 0, 1, 1], [], []>} : vector<64x128xbf16>, vector<128x128xbf16>, vector<64x128xf32> -> vector<64x128xf32>
    %cst_4 = arith.constant 0.000000e+00 : f32
    %5 = vector.broadcast %cst_4 : f32 to vector<64x128xf32>
    %6 = arith.maximumf %4, %5 : vector<64x128xf32>
    %7 = arith.truncf %6 : vector<64x128xf32> to vector<64x128xbf16>
    %c1 = arith.constant 1 : index
    %c0_5 = arith.constant 0 : index
    %c0_6 = arith.constant 0 : index
    %8 = vector.load %arg2[%c1, %c0_5, %c0_6] : memref<5x128x128xbf16, #tpu.memory_space<vmem>>, vector<1x128x128xbf16>
    %9 = vector.shape_cast %8 : vector<1x128x128xbf16> to vector<128x128xbf16>
    %cst_7 = arith.constant dense<0.000000e+00> : vector<64x128xf32>
    %10 = tpu.matmul %7, %9, %cst_7 {dimension_numbers = #tpu.dot_dimension_numbers<[1], [0], [0], [1], [0, 0, 1, 1], [], []>} : vector<64x128xbf16>, vector<128x128xbf16>, vector<64x128xf32> -> vector<64x128xf32>
    %cst_8 = arith.constant 0.000000e+00 : f32
    %11 = vector.broadcast %cst_8 : f32 to vector<64x128xf32>
    %12 = arith.maximumf %10, %11 : vector<64x128xf32>
    %13 = arith.truncf %12 : vector<64x128xf32> to vector<64x128xbf16>
    %c2 = arith.constant 2 : index
    %c0_9 = arith.constant 0 : index
    %c0_10 = arith.constant 0 : index
    %14 = vector.load %arg2[%c2, %c0_9, %c0_10] : memref<5x128x128xbf16, #tpu.memory_space<vmem>>, vector<1x128x128xbf16>
    %15 = vector.shape_cast %14 : vector<1x128x128xbf16> to vector<128x128xbf16>
    %cst_11 = arith.constant dense<0.000000e+00> : vector<64x128xf32>
    %16 = tpu.matmul %13, %15, %cst_11 {dimension_numbers = #tpu.dot_dimension_numbers<[1], [0], [0], [1], [0, 0, 1, 1], [], []>} : vector<64x128xbf16>, vector<128x128xbf16>, vector<64x128xf32> -> vector<64x128xf32>
    %cst_12 = arith.constant 0.000000e+00 : f32
    %17 = vector.broadcast %cst_12 : f32 to vector<64x128xf32>
    %18 = arith.maximumf %16, %17 : vector<64x128xf32>
    %19 = arith.truncf %18 : vector<64x128xf32> to vector<64x128xbf16>
    %c3 = arith.constant 3 : index
    %c0_13 = arith.constant 0 : index
    %c0_14 = arith.constant 0 : index
    %20 = vector.load %arg2[%c3, %c0_13, %c0_14] : memref<5x128x128xbf16, #tpu.memory_space<vmem>>, vector<1x128x128xbf16>
    %21 = vector.shape_cast %20 : vector<1x128x128xbf16> to vector<128x128xbf16>
    %cst_15 = arith.constant dense<0.000000e+00> : vector<64x128xf32>
    %22 = tpu.matmul %19, %21, %cst_15 {dimension_numbers = #tpu.dot_dimension_numbers<[1], [0], [0], [1], [0, 0, 1, 1], [], []>} : vector<64x128xbf16>, vector<128x128xbf16>, vector<64x128xf32> -> vector<64x128xf32>
    %cst_16 = arith.constant 0.000000e+00 : f32
    %23 = vector.broadcast %cst_16 : f32 to vector<64x128xf32>
    %24 = arith.maximumf %22, %23 : vector<64x128xf32>
    %25 = arith.truncf %24 : vector<64x128xf32> to vector<64x128xbf16>
    %c4 = arith.constant 4 : index
    %c0_17 = arith.constant 0 : index
    %c0_18 = arith.constant 0 : index
    %26 = vector.load %arg2[%c4, %c0_17, %c0_18] : memref<5x128x128xbf16, #tpu.memory_space<vmem>>, vector<1x128x128xbf16>
    %27 = vector.shape_cast %26 : vector<1x128x128xbf16> to vector<128x128xbf16>
    %cst_19 = arith.constant dense<0.000000e+00> : vector<64x128xf32>
    %28 = tpu.matmul %25, %27, %cst_19 {dimension_numbers = #tpu.dot_dimension_numbers<[1], [0], [0], [1], [0, 0, 1, 1], [], []>} : vector<64x128xbf16>, vector<128x128xbf16>, vector<64x128xf32> -> vector<64x128xf32>
    %c0_20 = arith.constant 0 : index
    %c0_21 = arith.constant 0 : index
    %29 = vector.load %arg3[%c0_20, %c0_21] : memref<64x128xf32, #tpu.memory_space<vmem>>, vector<64x128xf32>
    tpu.vector_store %arg3[%c0_20, %c0_21], %28 {strides = array<i32>} : memref<64x128xf32, #tpu.memory_space<vmem>>, vector<64x128xf32>,
    return
  }
  func.func @transform_0(%arg0: i32) -> (i32, i32) {
    %c0_i32 = arith.constant 0 : i32
    %c0_i32_0 = arith.constant 0 : i32
    return %arg0, %c0_i32 : i32, i32
  }
  func.func @transform_1(%arg0: i32) -> (i32, i32, i32) {
    %c0_i32 = arith.constant 0 : i32
    %c0_i32_0 = arith.constant 0 : i32
    %c0_i32_1 = arith.constant 0 : i32
    %c0_i32_2 = arith.constant 0 : i32
    return %c0_i32, %c0_i32_0, %c0_i32_1 : i32, i32, i32
  }
  func.func @transform_2(%arg0: i32) -> (i32, i32) {
    %c0_i32 = arith.constant 0 : i32
    %c0_i32_0 = arith.constant 0 : i32
    return %arg0, %c0_i32 : i32, i32
  }
}

module attributes {stable_mosaic.version = 11 : i64} {
  func.func @odefunc_kernel(%arg0: i32, %arg1: memref<64x128xf32, #tpu.memory_space<vmem>>, %arg2: memref<5x128x128xbf16, #tpu.memory_space<vmem>>, %arg3: memref<64x128xf32, #tpu.memory_space<vmem>>) attributes {dimension_semantics = [#tpu.dimension_semantics<parallel>], iteration_bounds = array<i64: 1>, scalar_prefetch = 0 : i64, scratch_operands = 0 : i64, tpu.core_type = #tpu.core_type<tc>, window_params = [{transform_indices = @transform_0, window_bounds = array<i64: 64, 128>}, {pipeline_mode = #tpu.pipeline_mode<synchronous>, transform_indices = @transform_1, window_bounds = array<i64: 5, 128, 128>}, {transform_indices = @transform_2, window_bounds = array<i64: 64, 128>}]} {
    %c0 = arith.constant 0 : index
    %c0_0 = arith.constant 0 : index
    %0 = vector.load %arg1[%c0, %c0_0] : memref<64x128xf32, #tpu.memory_space<vmem>>, vector<64x128xf32>
    %1 = arith.truncf %0 : vector<64x128xf32> to vector<64x128xbf16>
    %c0_1 = arith.constant 0 : index
    %c0_2 = arith.constant 0 : index
    %c0_3 = arith.constant 0 : index
    %2 = vector.load %arg2[%c0_1, %c0_2, %c0_3] : memref<5x128x128xbf16, #tpu.memory_space<vmem>>, vector<1x128x128xbf16>
    %3 = vector.shape_cast %2 : vector<1x128x128xbf16> to vector<128x128xbf16>
    %cst = arith.constant dense<0.000000e+00> : vector<64x128xf32>
    %4 = tpu.matmul %1, %3, %cst {dimension_numbers = #tpu.dot_dimension_numbers<[1], [0], [0], [1], [0, 0, 1, 1], [], []>} : vector<64x128xbf16>, vector<128x128xbf16>, vector<64x128xf32> -> vector<64x128xf32>
    %cst_4 = arith.constant 0.000000e+00 : f32
    %5 = vector.broadcast %cst_4 : f32 to vector<64x128xf32>
    %6 = arith.maximumf %4, %5 : vector<64x128xf32>
    %7 = arith.truncf %6 : vector<64x128xf32> to vector<64x128xbf16>
    %c1 = arith.constant 1 : index
    %c0_5 = arith.constant 0 : index
    %c0_6 = arith.constant 0 : index
    %8 = vector.load %arg2[%c1, %c0_5, %c0_6] : memref<5x128x128xbf16, #tpu.memory_space<vmem>>, vector<1x128x128xbf16>
    %9 = vector.shape_cast %8 : vector<1x128x128xbf16> to vector<128x128xbf16>
    %cst_7 = arith.constant dense<0.000000e+00> : vector<64x128xf32>
    %10 = tpu.matmul %7, %9, %cst_7 {dimension_numbers = #tpu.dot_dimension_numbers<[1], [0], [0], [1], [0, 0, 1, 1], [], []>} : vector<64x128xbf16>, vector<128x128xbf16>, vector<64x128xf32> -> vector<64x128xf32>
    %cst_8 = arith.constant 0.000000e+00 : f32
    %11 = vector.broadcast %cst_8 : f32 to vector<64x128xf32>
    %12 = arith.maximumf %10, %11 : vector<64x128xf32>
    %13 = arith.truncf %12 : vector<64x128xf32> to vector<64x128xbf16>
    %c2 = arith.constant 2 : index
    %c0_9 = arith.constant 0 : index
    %c0_10 = arith.constant 0 : index
    %14 = vector.load %arg2[%c2, %c0_9, %c0_10] : memref<5x128x128xbf16, #tpu.memory_space<vmem>>, vector<1x128x128xbf16>
    %15 = vector.shape_cast %14 : vector<1x128x128xbf16> to vector<128x128xbf16>
    %cst_11 = arith.constant dense<0.000000e+00> : vector<64x128xf32>
    %16 = tpu.matmul %13, %15, %cst_11 {dimension_numbers = #tpu.dot_dimension_numbers<[1], [0], [0], [1], [0, 0, 1, 1], [], []>} : vector<64x128xbf16>, vector<128x128xbf16>, vector<64x128xf32> -> vector<64x128xf32>
    %cst_12 = arith.constant 0.000000e+00 : f32
    %17 = vector.broadcast %cst_12 : f32 to vector<64x128xf32>
    %18 = arith.maximumf %16, %17 : vector<64x128xf32>
    %19 = arith.truncf %18 : vector<64x128xf32> to vector<64x128xbf16>
    %c3 = arith.constant 3 : index
    %c0_13 = arith.constant 0 : index
    %c0_14 = arith.constant 0 : index
    %20 = vector.load %arg2[%c3, %c0_13, %c0_14] : memref<5x128x128xbf16, #tpu.memory_space<vmem>>, vector<1x128x128xbf16>
    %21 = vector.shape_cast %20 : vector<1x128x128xbf16> to vector<128x128xbf16>
    %cst_15 = arith.constant dense<0.000000e+00> : vector<64x128xf32>
    %22 = tpu.matmul %19, %21, %cst_15 {dimension_numbers = #tpu.dot_dimension_numbers<[1], [0], [0], [1], [0, 0, 1, 1], [], []>} : vector<64x128xbf16>, vector<128x128xbf16>, vector<64x128xf32> -> vector<64x128xf32>
    %cst_16 = arith.constant 0.000000e+00 : f32
    %23 = vector.broadcast %cst_16 : f32 to vector<64x128xf32>
    %24 = arith.maximumf %22, %23 : vector<64x128xf32>
    %25 = arith.truncf %24 : vector<64x128xf32> to vector<64x128xbf16>
    %c4 = arith.constant 4 : index
    %c0_17 = arith.constant 0 : index
    %c0_18 = arith.constant 0 : index
    %26 = vector.load %arg2[%c4, %c0_17, %c0_18] : memref<5x128x128xbf16, #tpu.memory_space<vmem>>, vector<1x128x128xbf16>
    %27 = vector.shape_cast %26 : vector<1x128x128xbf16> to vector<128x128xbf16>
    %cst_19 = arith.constant dense<0.000000e+00> : vector<64x128xf32>
    %28 = tpu.matmul %25, %27, %cst_19 {dimension_numbers = #tpu.dot_dimension_numbers<[1], [0], [0], [1], [0, 0, 1, 1], [], []>} : vector<64x128xbf16>, vector<128x128xbf16>, vector<64x128xf32> -> vector<64x128xf32>
    %c0_20 = arith.constant 0 : index
    %c0_21 = arith.constant 0 : index
    %29 = vector.load %arg3[%c0_20, %c0_21] : memref<64x128xf32, #tpu.memory_space<vmem>>, vector<64x128xf32>
    tpu.vector_store %arg3[%c0_20, %c0_21], %28 {strides = array<i32>} : memref<64x128xf32, #tpu.memory_space<vmem>>, vector<64x128xf32>,
    return
  }
  func.func @transform_0(%arg0: i32) -> (i32, i32) {
    %c0_i32 = arith.constant 0 : i32
    %c0_i32_0 = arith.constant 0 : i32
    return %arg0, %c0_i32 : i32, i32
  }
  func.func @transform_1(%arg0: i32) -> (i32, i32, i32) {
    %c0_i32 = arith.constant 0 : i32
    %c0_i32_0 = arith.constant 0 : i32
    %c0_i32_1 = arith.constant 0 : i32
    %c0_i32_2 = arith.constant 0 : i32
    return %c0_i32, %c0_i32_0, %c0_i32_1 : i32, i32, i32
  }
  func.func @transform_2(%arg0: i32) -> (i32, i32) {
    %c0_i32 = arith.constant 0 : i32
    %c0_i32_0 = arith.constant 0 : i32
    return %arg0, %c0_i32 : i32, i32
  }
}

</mosaic_0001>

<bundles_post_ra>
// kernel: tpu_custom_call.1
= control target key start
LH: loop header
LB: loop body
LE: loop exit
PB: predicated region body
PF: predicated region fallthrough
CT: control target
= control target key end

     0   :  { %7 = vsyncpa [#allocation3], 0  ;;  %s1195_s0 = inlined_call_operand.hbm [shape: f32[64,128], index: 0, kind: input, shape index: {}]   ;;  %s1196_s1 = inlined_call_operand.hbm [shape: bf16[5,128,128], index: 1, kind: input, shape index: {}]   ;;  %s1197_s2 = inlined_call_operand.hbm [shape: f32[64,128], index: 2, kind: output, shape index: {}]  }
   0x1   :  { %8 = vsyncpa [#allocation6], 0 }
   0x2   :  { %9 = vsyncpa [#allocation4], 0  ;;  %s1131_s9 = smov [#allocation2]   ;;  %s1059_s13 = scalar_lea.hbm %s1195_s0, 1024 }
   0x3   :  { %s15_s10 = sshll.u32 %s1131_s9, 4  ;;  %p1060_p0 = scmp.ne.s32.totalorder %s1195_s0, %s1059_s13  ;;  %s16_s10 = int_to_ptr.vmem [resolvable:$true] %s15_s10 }
   0x4   :  { %p1063_p1 = scmp.lt.u32.totalorder %s1059_s13, %s1195_s0 }
   0x6   :  { %p1065_p2 = pnand %p1063_p1, %p1060_p0 }
   0x8   :  { %1068 = shalt.err (!%p1065_p2)
}
   0x9   :  { %s1069_s18 = scalar_lea.vmem %s16_s10, 1024  ;;  %p1074_p4 = scmp.lt.s32.totalorder %s16_s10, %s16_s10 }
   0xa   :  { %p1070_p3 = scmp.ne.s32.totalorder %s16_s10, %s1069_s18  ;;  %p1075_p5 = scmp.lt.s32.totalorder %s1069_s18, %s1069_s18 }
   0xc   :  { %p1076_p6 = por %p1075_p5, %p1074_p4 }
   0xe   :  { %p1077_p7 = pnand %p1076_p6, %p1070_p3 }
  0x10   :  { %1080 = shalt.err (!%p1077_p7)
}
  0x11   :  { %s1132_s19 = smov 128   ;;  %s1133_s20 = smov 8  }
  0x12   :  { %21 = dma.hbm_to_vmem [thread:$0]  %s1195_s0, 1024, %s16_s10, [#allocation3], %s1132_s19, %s1132_s19, %s1133_s20  }
  0x13   :  { %s1134_s23 = smov [#allocation5]   ;;  %s1081_s27 = scalar_lea.hbm %s1196_s1, 5120 }
  0x14   :  { %s27_s24 = sshll.u32 %s1134_s23, 4  ;;  %p1082_p8 = scmp.ne.s32.totalorder %s1196_s1, %s1081_s27  ;;  %s28_s24 = int_to_ptr.vmem [resolvable:$true] %s27_s24 }
  0x15   :  { %p1085_p9 = scmp.lt.u32.totalorder %s1081_s27, %s1196_s1 }
  0x17   :  { %p1087_p10 = pnand %p1085_p9, %p1082_p8 }
  0x19   :  { %1090 = shalt.err (!%p1087_p10)
}
  0x1a   :  { %s1091_s4 = scalar_lea.vmem %s28_s24, 5120  ;;  %p1096_p12 = scmp.lt.s32.totalorder %s28_s24, %s28_s24 }
  0x1b   :  { %p1092_p11 = scmp.ne.s32.totalorder %s28_s24, %s1091_s4  ;;  %p1097_p13 = scmp.lt.s32.totalorder %s1091_s4, %s1091_s4 }
  0x1d   :  { %p1098_p0 = por %p1097_p13, %p1096_p12 }
  0x1f   :  { %p1099_p1 = pnand %p1098_p0, %p1092_p11 }
  0x21   :  { %1102 = shalt.err (!%p1099_p1)
}
  0x22   :  { %s1135_s0 = smov 64   ;;  %s1136_s5 = smov 4  }
  0x23   :  { %33 = dma.hbm_to_vmem [thread:$0]  %s1196_s1, 5120, %s28_s24, [#allocation6], %s1135_s0, %s1135_s0, %s1136_s5  }
  0x24   :  { %1125 = dma.done.wait [#allocation3], 1024  }
  0x25   :  { %1126 = vsyncadd [#allocation3], 4294966272 }
  0x26   :  { %1127 = dma.done.wait [#allocation6], 5120  }
  0x27   :  { %1128 = vsyncadd [#allocation6], 4294962176  ;;  %v1019_v0 = vld [vmem:[#allocation5] sm:$0xff]   ;;  %v1020_v1 = vld [vmem:[#allocation5 + $0x8] sm:$0xff]   ;;  %s1137_s1 = smov [#allocation7]  }
  0x28   :  { %876 = vmatprep.subr.bf16.mxu0 %v1019_v0  ;;  %v1021_v2 = vld [vmem:[#allocation5 + $0x10] sm:$0xff]   ;;  %v1022_v3 = vld [vmem:[#allocation5 + $0x18] sm:$0xff]   ;;  %v41_v4 = vld [vmem:[#allocation2] sm:$0xff]  ;;  %s763_s8 = sshll.u32 %s1137_s1, 4  ;;  %s764_s8 = int_to_ptr.vmem [resolvable:$true] %s763_s8 }
  0x29   :  { %877 = vmatpush3.bf16.msra.mxu0 %v1019_v0  ;;  %v42_v5 = vld [vmem:[#allocation2 + $0x8] sm:$0xff]  ;;  %v1023_v7 = vld [vmem:[#allocation5 + $0x20] sm:$0xff]   ;;  %v1029_v10 = vld [vmem:[#allocation5 + $0x50] sm:$0xff]   ;;  %s1103_s9 = scalar_lea.vmem %s764_s8, 1024  ;;  %p1108_p3 = scmp.lt.s32.totalorder %s764_s8, %s764_s8 }
  0x2a   :  { %878 = vmatprep.subr.bf16.mxu0 %v1020_v1  ;;  %v49_v6 = vpack.c.bf16 %v42_v5, %v41_v4  ;;  %v1027_v8 = vld [vmem:[#allocation5 + $0x40] sm:$0xff]   ;;  %v1028_v9 = vld [vmem:[#allocation5 + $0x48] sm:$0xff]   ;;  %v1030_v12 = vld [vmem:[#allocation5 + $0x58] sm:$0xff]   ;;  %p1104_p2 = scmp.ne.s32.totalorder %s764_s8, %s1103_s9  ;;  %p1109_p4 = scmp.lt.s32.totalorder %s1103_s9, %s1103_s9 }
  0x2b   :  { %900 = vmatprep.subr.bf16.mxu1 %v1027_v8  ;;  %v1024_v11 = vld [vmem:[#allocation5 + $0x28] sm:$0xff]   ;;  %v1025_v13 = vld [vmem:[#allocation5 + $0x30] sm:$0xff]   ;;  %v1031_v14 = vld [vmem:[#allocation5 + $0x60] sm:$0xff]  }
  0x2c   :  { %892 = vmatprep.mubr.bf16.mxu0 %v49_v6  ;;  %901 = vmatpush3.bf16.msra.mxu1 %v1027_v8  ;;  %v1026_v15 = vld [vmem:[#allocation5 + $0x38] sm:$0xff]   ;;  %v43_v16 = vld [vmem:[#allocation2 + $0x10] sm:$0xff]  ;;  %v1032_v18 = vld [vmem:[#allocation5 + $0x68] sm:$0xff]   ;;  %p1110_p5 = por %p1109_p4, %p1108_p3 }
  0x2d   :  { %879 = vmatpush3.bf16.msra.mxu0 %v1020_v1  ;;  %902 = vmatprep.subr.bf16.mxu1 %v1028_v9  ;;  %v44_v17 = vld [vmem:[#allocation2 + $0x18] sm:$0xff]  ;;  %v45_v19 = vld [vmem:[#allocation2 + $0x20] sm:$0xff]  ;;  %v46_v20 = vld [vmem:[#allocation2 + $0x28] sm:$0xff] }
  0x2e   :  { %880 = vmatprep.subr.bf16.mxu0 %v1021_v2  ;;  %v50_v21 = vpack.c.bf16 %v44_v17, %v43_v16  ;;  %v51_v22 = vpack.c.bf16 %v46_v20, %v45_v19  ;;  %v47_v23 = vld [vmem:[#allocation2 + $0x30] sm:$0xff]  ;;  %v48_v24 = vld [vmem:[#allocation2 + $0x38] sm:$0xff]  ;;  %v1035_v28 = vld [vmem:[#allocation5 + $0x80] sm:$0xff]   ;;  %p1111_p6 = pnand %p1110_p5, %p1104_p2 }
  0x2f   :  { %v52_v25 = vpack.c.bf16 %v48_v24, %v47_v23  ;;  %v1033_v26 = vld [vmem:[#allocation5 + $0x70] sm:$0xff]   ;;  %v1034_v27 = vld [vmem:[#allocation5 + $0x78] sm:$0xff]   ;;  %v1036_v29 = vld [vmem:[#allocation5 + $0x88] sm:$0xff]  }
  0x30   :  { %903 = vmatpush3.bf16.msra.mxu1 %v1028_v9  ;;  %v1037_v30 = vld [vmem:[#allocation5 + $0x90] sm:$0xff]   ;;  %v1038_v31 = vld [vmem:[#allocation5 + $0x98] sm:$0xff]   ;;  %v1039_v32 = vld [vmem:[#allocation5 + $0xa0] sm:$0xff]  }
  0x31   :  { %881 = vmatpush3.bf16.msra.mxu0 %v1021_v2  ;;  %904 = vmatprep.subr.bf16.mxu1 %v1029_v10  ;;  %v1040_v33 = vld [vmem:[#allocation5 + $0xa8] sm:$0xff]   ;;  %v1041_v54 = vld [vmem:[#allocation5 + $0xb0] sm:$0xff]   ;;  %v1042_v55 = vld [vmem:[#allocation5 + $0xb8] sm:$0xff]  }
  0x32   :  { %882 = vmatprep.subr.bf16.mxu0 %v1022_v3  ;;  %v1043_v56 = vld [vmem:[#allocation5 + $0xc0] sm:$0xff]   ;;  %v1044_v57 = vld [vmem:[#allocation5 + $0xc8] sm:$0xff]   ;;  %v1045_v58 = vld [vmem:[#allocation5 + $0xd0] sm:$0xff]  }
  0x33   :  { %v1046_v59 = vld [vmem:[#allocation5 + $0xd8] sm:$0xff]   ;;  %v1047_v60 = vld [vmem:[#allocation5 + $0xe0] sm:$0xff]   ;;  %v1048_v61 = vld [vmem:[#allocation5 + $0xe8] sm:$0xff]  }
  0x34   :  { %905 = vmatpush3.bf16.msra.mxu1 %v1029_v10  ;;  %v1050_v19 = vld [vmem:[#allocation5 + $0xf8] sm:$0xff]   ;;  %v1051_v20 = vld [vmem:[#allocation5 + $0x100] sm:$0xff]  }
  0x35   :  { %883 = vmatpush3.bf16.msra.mxu0 %v1022_v3  ;;  %906 = vmatprep.subr.bf16.mxu1 %v1030_v12  ;;  %v1054_v23 = vld [vmem:[#allocation5 + $0x118] sm:$0xff]   ;;  %v1055_v24 = vld [vmem:[#allocation5 + $0x120] sm:$0xff]  }
  0x36   :  { %884 = vmatprep.subr.bf16.mxu0 %v1023_v7 }
  0x38   :  { %907 = vmatpush3.bf16.msra.mxu1 %v1030_v12 }
  0x39   :  { %885 = vmatpush3.bf16.msra.mxu0 %v1023_v7  ;;  %908 = vmatprep.subr.bf16.mxu1 %v1031_v14 }
  0x3a   :  { %886 = vmatprep.subr.bf16.mxu0 %v1024_v11 }
  0x3c   :  { %909 = vmatpush3.bf16.msra.mxu1 %v1031_v14 }
  0x3d   :  { %887 = vmatpush3.bf16.msra.mxu0 %v1024_v11  ;;  %910 = vmatprep.subr.bf16.mxu1 %v1032_v18 }
  0x3e   :  { %888 = vmatprep.subr.bf16.mxu0 %v1025_v13 }
  0x40   :  { %911 = vmatpush3.bf16.msra.mxu1 %v1032_v18  ;;  %v1049_v18 = vld [vmem:[#allocation5 + $0xf0] sm:$0xff]  }
  0x41   :  { %889 = vmatpush3.bf16.msra.mxu0 %v1025_v13  ;;  %912 = vmatprep.subr.bf16.mxu1 %v1033_v26 }
  0x42   :  { %890 = vmatprep.subr.bf16.mxu0 %v1026_v15 }
  0x44   :  { %913 = vmatpush3.bf16.msra.mxu1 %v1033_v26 }
  0x45   :  { %891 = vmatpush3.bf16.msra.mxu0 %v1026_v15  ;;  %914 = vmatprep.subr.bf16.mxu1 %v1034_v27 }
  0x46   :  { %924 = vmatprep.subr.bf16.mxu0 %v1035_v28 }
  0x48   :  { %893 = vmatmul.mubr.bf16.vlgmr.msra.gmra.mrb[0].mxu0 %v50_v21  ;;  %915 = vmatpush3.bf16.msra.mxu1 %v1034_v27  ;;  %v1052_v21 = vld [vmem:[#allocation5 + $0x108] sm:$0xff]  }
  0x49   :  { %896 = vmatprep.mubr.bf16.mxu0 %v51_v22  ;;  %925 = vmatpush3.bf16.msra.mxu0 %v1035_v28  ;;  %v1053_v22 = vld [vmem:[#allocation5 + $0x110] sm:$0xff]  }
  0x4a   :  { %926 = vmatprep.subr.bf16.mxu0 %v1036_v29  ;;  %948 = vmatprep.subr.bf16.mxu1 %v1043_v56 }
  0x4d   :  { %927 = vmatpush3.bf16.msra.mxu0 %v1036_v29 }
  0x4e   :  { %928 = vmatprep.subr.bf16.mxu0 %v1037_v30 }
  0x50   :  { %897 = vmatmul.mubr.bf16.gmra.mrb[4].mxu0 %v52_v25  ;;  %v1056_v25 = vld [vmem:[#allocation5 + $0x128] sm:$0xff]  }
  0x51   :  { %929 = vmatpush3.bf16.msra.mxu0 %v1037_v30 }
  0x52   :  { %930 = vmatprep.subr.bf16.mxu0 %v1038_v31 }
  0x55   :  { %931 = vmatpush3.bf16.msra.mxu0 %v1038_v31 }
  0x56   :  { %932 = vmatprep.subr.bf16.mxu0 %v1039_v32 }
  0x59   :  { %933 = vmatpush3.bf16.msra.mxu0 %v1039_v32 }
  0x5a   :  { %934 = vmatprep.subr.bf16.mxu0 %v1040_v33 }
  0x5d   :  { %935 = vmatpush3.bf16.msra.mxu0 %v1040_v33 }
  0x5e   :  { %936 = vmatprep.subr.bf16.mxu0 %v1041_v54 }
  0x61   :  { %937 = vmatpush3.bf16.msra.mxu0 %v1041_v54 }
  0x62   :  { %938 = vmatprep.subr.bf16.mxu0 %v1042_v55 }
  0x65   :  { %939 = vmatpush3.bf16.msra.mxu0 %v1042_v55 }
  0x66   :  { %972 = vmatprep.subr.bf16.mxu0 %v1051_v20 }
 0x11b   :  { %v894_v34 = vpop.f32.mrb[0].mxu0 }
 0x11c   :  { %v151_v35 = vpop.f32.mrb[1].mxu0  ;;  %v184_v37 = vmax.f32 %v894_v34, 0.0 }
 0x11d   :  { %v895_v36 = vpop.f32.mrb[2].mxu0  ;;  %v182_v40 = vmax.f32 %v151_v35, 0.0 }
 0x11e   :  { %v185_v38 = vmax.f32 %v895_v36, 0.0  ;;  %v154_v39 = vpop.f32.mrb[3].mxu0 }
 0x11f   :  { %v183_v41 = vmax.f32 %v154_v39, 0.0 }
 0x120   :  { %v191_v42 = vpack.c.bf16 %v185_v38, %v184_v37 }
 0x121   :  { %v190_v43 = vpack.c.bf16 %v183_v41, %v182_v40 }
 0x123   :  { %v898_v44 = vpop.f32.mrb[4].mxu0  ;;  %916 = vmatprep.mubr.bf16.mxu1 %v190_v43 }
 0x124   :  { %v167_v45 = vpop.f32.mrb[5].mxu0  ;;  %917 = vmatmul.mubr.bf16.vlgmr.msra.gmra.mrb[0].mxu1 %v191_v42  ;;  %v188_v47 = vmax.f32 %v898_v44, 0.0 }
 0x125   :  { %v899_v46 = vpop.f32.mrb[6].mxu0  ;;  %v186_v50 = vmax.f32 %v167_v45, 0.0  ;;  %949 = vmatpush3.bf16.msra.mxu1 %v1043_v56 }
 0x126   :  { %v189_v48 = vmax.f32 %v899_v46, 0.0  ;;  %v170_v49 = vpop.f32.mrb[7].mxu0  ;;  %950 = vmatprep.subr.bf16.mxu1 %v1044_v57  ;;  %v1057_v46 = vld [vmem:[#allocation5 + $0x130] sm:$0xff]  }
 0x127   :  { %v187_v51 = vmax.f32 %v170_v49, 0.0 }
 0x128   :  { %v193_v52 = vpack.c.bf16 %v189_v48, %v188_v47  ;;  %v1058_v47 = vld [vmem:[#allocation5 + $0x138] sm:$0xff]  }
 0x129   :  { %v192_v53 = vpack.c.bf16 %v187_v51, %v186_v50  ;;  %951 = vmatpush3.bf16.msra.mxu1 %v1044_v57 }
 0x12a   :  { %952 = vmatprep.subr.bf16.mxu1 %v1045_v58 }
 0x12b   :  { %920 = vmatprep.mubr.bf16.mxu1 %v192_v53 }
 0x12c   :  { %921 = vmatmul.mubr.bf16.gmra.mrb[4].mxu1 %v193_v52 }
 0x12d   :  { %953 = vmatpush3.bf16.msra.mxu1 %v1045_v58 }
 0x12e   :  { %954 = vmatprep.subr.bf16.mxu1 %v1046_v59 }
 0x131   :  { %955 = vmatpush3.bf16.msra.mxu1 %v1046_v59 }
 0x132   :  { %956 = vmatprep.subr.bf16.mxu1 %v1047_v60 }
 0x135   :  { %957 = vmatpush3.bf16.msra.mxu1 %v1047_v60 }
 0x136   :  { %958 = vmatprep.subr.bf16.mxu1 %v1048_v61 }
 0x139   :  { %959 = vmatpush3.bf16.msra.mxu1 %v1048_v61 }
 0x13a   :  { %960 = vmatprep.subr.bf16.mxu1 %v1049_v18 }
 0x13d   :  { %961 = vmatpush3.bf16.msra.mxu1 %v1049_v18 }
 0x13e   :  { %962 = vmatprep.subr.bf16.mxu1 %v1050_v19 }
 0x141   :  { %963 = vmatpush3.bf16.msra.mxu1 %v1050_v19 }
 0x142   :  { %996 = vmatprep.subr.bf16.mxu1 %v1051_v20 }
 0x1f7   :  { %v918_v62 = vpop.f32.mrb[0].mxu1 }
 0x1f8   :  { %v293_v63 = vpop.f32.mrb[1].mxu1  ;;  %v326_v1 = vmax.f32 %v918_v62, 0.0 }
 0x1f9   :  { %v919_v0 = vpop.f32.mrb[2].mxu1  ;;  %v324_v4 = vmax.f32 %v293_v63, 0.0 }
 0x1fa   :  { %v327_v2 = vmax.f32 %v919_v0, 0.0  ;;  %v296_v3 = vpop.f32.mrb[3].mxu1 }
 0x1fb   :  { %v325_v5 = vmax.f32 %v296_v3, 0.0 }
 0x1fc   :  { %v333_v6 = vpack.c.bf16 %v327_v2, %v326_v1 }
 0x1fd   :  { %v332_v7 = vpack.c.bf16 %v325_v5, %v324_v4 }
 0x1ff   :  { %v922_v8 = vpop.f32.mrb[4].mxu1  ;;  %940 = vmatprep.mubr.bf16.mxu0 %v332_v7 }
 0x200   :  { %v309_v9 = vpop.f32.mrb[5].mxu1  ;;  %941 = vmatmul.mubr.bf16.vlgmr.msra.gmra.mrb[8].mxu0 %v333_v6  ;;  %v330_v11 = vmax.f32 %v922_v8, 0.0 }
 0x201   :  { %v923_v10 = vpop.f32.mrb[6].mxu1  ;;  %v328_v14 = vmax.f32 %v309_v9, 0.0  ;;  %973 = vmatpush3.bf16.msra.mxu0 %v1051_v20 }
 0x202   :  { %v331_v12 = vmax.f32 %v923_v10, 0.0  ;;  %v312_v13 = vpop.f32.mrb[7].mxu1  ;;  %974 = vmatprep.subr.bf16.mxu0 %v1052_v21 }
 0x203   :  { %v329_v15 = vmax.f32 %v312_v13, 0.0 }
 0x204   :  { %v335_v16 = vpack.c.bf16 %v331_v12, %v330_v11 }
 0x205   :  { %v334_v17 = vpack.c.bf16 %v329_v15, %v328_v14  ;;  %975 = vmatpush3.bf16.msra.mxu0 %v1052_v21 }
 0x206   :  { %976 = vmatprep.subr.bf16.mxu0 %v1053_v22 }
 0x207   :  { %944 = vmatprep.mubr.bf16.mxu0 %v334_v17 }
 0x208   :  { %945 = vmatmul.mubr.bf16.gmra.mrb[12].mxu0 %v335_v16 }
 0x209   :  { %977 = vmatpush3.bf16.msra.mxu0 %v1053_v22 }
 0x20a   :  { %978 = vmatprep.subr.bf16.mxu0 %v1054_v23 }
 0x20d   :  { %979 = vmatpush3.bf16.msra.mxu0 %v1054_v23 }
 0x20e   :  { %980 = vmatprep.subr.bf16.mxu0 %v1055_v24 }
 0x211   :  { %981 = vmatpush3.bf16.msra.mxu0 %v1055_v24 }
 0x212   :  { %982 = vmatprep.subr.bf16.mxu0 %v1056_v25 }
 0x215   :  { %983 = vmatpush3.bf16.msra.mxu0 %v1056_v25 }
 0x216   :  { %984 = vmatprep.subr.bf16.mxu0 %v1057_v46 }
 0x219   :  { %985 = vmatpush3.bf16.msra.mxu0 %v1057_v46 }
 0x21a   :  { %986 = vmatprep.subr.bf16.mxu0 %v1058_v47 }
 0x21d   :  { %987 = vmatpush3.bf16.msra.mxu0 %v1058_v47 }
 0x2d3   :  { %v942_v26 = vpop.f32.mrb[8].mxu0 }
 0x2d4   :  { %v435_v27 = vpop.f32.mrb[9].mxu0  ;;  %v468_v29 = vmax.f32 %v942_v26, 0.0 }
 0x2d5   :  { %v943_v28 = vpop.f32.mrb[10].mxu0  ;;  %v466_v32 = vmax.f32 %v435_v27, 0.0 }
 0x2d6   :  { %v469_v30 = vmax.f32 %v943_v28, 0.0  ;;  %v438_v31 = vpop.f32.mrb[11].mxu0 }
 0x2d7   :  { %v467_v33 = vmax.f32 %v438_v31, 0.0 }
 0x2d8   :  { %v475_v34 = vpack.c.bf16 %v469_v30, %v468_v29 }
 0x2d9   :  { %v474_v35 = vpack.c.bf16 %v467_v33, %v466_v32 }
 0x2db   :  { %v946_v36 = vpop.f32.mrb[12].mxu0  ;;  %964 = vmatprep.mubr.bf16.mxu1 %v474_v35 }
 0x2dc   :  { %v451_v37 = vpop.f32.mrb[13].mxu0  ;;  %965 = vmatmul.mubr.bf16.vlgmr.msra.gmra.mrb[8].mxu1 %v475_v34  ;;  %v472_v39 = vmax.f32 %v946_v36, 0.0 }
 0x2dd   :  { %v947_v38 = vpop.f32.mrb[14].mxu0  ;;  %1004 = vmatpush3.bf16.msra.mxu1 %v1051_v20  ;;  %v470_v42 = vmax.f32 %v451_v37, 0.0 }
 0x2de   :  { %v473_v40 = vmax.f32 %v947_v38, 0.0  ;;  %v454_v41 = vpop.f32.mrb[15].mxu0  ;;  %997 = vmatprep.subr.bf16.mxu1 %v1052_v21 }
 0x2df   :  { %v471_v43 = vmax.f32 %v454_v41, 0.0 }
 0x2e0   :  { %v477_v44 = vpack.c.bf16 %v473_v40, %v472_v39 }
 0x2e1   :  { %v476_v45 = vpack.c.bf16 %v471_v43, %v470_v42  ;;  %1005 = vmatpush3.bf16.msra.mxu1 %v1052_v21 }
 0x2e2   :  { %998 = vmatprep.subr.bf16.mxu1 %v1053_v22 }
 0x2e3   :  { %968 = vmatprep.mubr.bf16.mxu1 %v476_v45 }
 0x2e4   :  { %969 = vmatmul.mubr.bf16.gmra.mrb[12].mxu1 %v477_v44 }
 0x2e5   :  { %1006 = vmatpush3.bf16.msra.mxu1 %v1053_v22 }
 0x2e6   :  { %999 = vmatprep.subr.bf16.mxu1 %v1054_v23 }
 0x2e9   :  { %1007 = vmatpush3.bf16.msra.mxu1 %v1054_v23 }
 0x2ea   :  { %1000 = vmatprep.subr.bf16.mxu1 %v1055_v24 }
 0x2ed   :  { %1008 = vmatpush3.bf16.msra.mxu1 %v1055_v24 }
 0x2ee   :  { %1001 = vmatprep.subr.bf16.mxu1 %v1056_v25 }
 0x2f1   :  { %1009 = vmatpush3.bf16.msra.mxu1 %v1056_v25 }
 0x2f2   :  { %1002 = vmatprep.subr.bf16.mxu1 %v1057_v46 }
 0x2f5   :  { %1010 = vmatpush3.bf16.msra.mxu1 %v1057_v46 }
 0x2f6   :  { %1003 = vmatprep.subr.bf16.mxu1 %v1058_v47 }
 0x2f9   :  { %1011 = vmatpush3.bf16.msra.mxu1 %v1058_v47 }
 0x3af   :  { %v966_v48 = vpop.f32.mrb[8].mxu1 }
 0x3b0   :  { %v577_v49 = vpop.f32.mrb[9].mxu1  ;;  %v610_v51 = vmax.f32 %v966_v48, 0.0 }
 0x3b1   :  { %v967_v50 = vpop.f32.mrb[10].mxu1  ;;  %v608_v54 = vmax.f32 %v577_v49, 0.0 }
 0x3b2   :  { %v611_v52 = vmax.f32 %v967_v50, 0.0  ;;  %v580_v53 = vpop.f32.mrb[11].mxu1 }
 0x3b3   :  { %v609_v55 = vmax.f32 %v580_v53, 0.0 }
 0x3b4   :  { %v617_v56 = vpack.c.bf16 %v611_v52, %v610_v51 }
 0x3b5   :  { %v616_v57 = vpack.c.bf16 %v609_v55, %v608_v54 }
 0x3b7   :  { %v970_v58 = vpop.f32.mrb[12].mxu1  ;;  %988 = vmatprep.mubr.bf16.mxu0 %v616_v57 }
 0x3b8   :  { %v593_v59 = vpop.f32.mrb[13].mxu1  ;;  %989 = vmatmul.mubr.bf16.vlgmr.msra.gmra.mrb[16].mxu0 %v617_v56  ;;  %v614_v61 = vmax.f32 %v970_v58, 0.0 }
 0x3b9   :  { %v971_v60 = vpop.f32.mrb[14].mxu1  ;;  %v612_v0 = vmax.f32 %v593_v59, 0.0 }
 0x3ba   :  { %v615_v62 = vmax.f32 %v971_v60, 0.0  ;;  %v596_v63 = vpop.f32.mrb[15].mxu1 }
 0x3bb   :  { %v613_v1 = vmax.f32 %v596_v63, 0.0 }
 0x3bc   :  { %v619_v2 = vpack.c.bf16 %v615_v62, %v614_v61 }
 0x3bd   :  { %v618_v3 = vpack.c.bf16 %v613_v1, %v612_v0 }
 0x3bf   :  { %992 = vmatprep.mubr.bf16.mxu1 %v618_v3 }
 0x3c0   :  { %993 = vmatmul.mubr.bf16.vlgmr.msra.gmra.mrb[16].mxu1 %v619_v2 }
 0x48b   :  { %v990_v4 = vpop.f32.mrb[16].mxu0 }
 0x48c   :  { %752 = vst [vmem:[#allocation7 + $0x10] sm:$0xff] %v990_v4  ;;  %v719_v5 = vpop.f32.mrb[17].mxu0 }
 0x48d   :  { %750 = vst [vmem:[#allocation7] sm:$0xff] %v719_v5  ;;  %v991_v6 = vpop.f32.mrb[18].mxu0 }
 0x48e   :  { %753 = vst [vmem:[#allocation7 + $0x18] sm:$0xff] %v991_v6  ;;  %v722_v7 = vpop.f32.mrb[19].mxu0 }
 0x48f   :  { %751 = vst [vmem:[#allocation7 + $0x8] sm:$0xff] %v722_v7 }
 0x493   :  { %v994_v8 = vpop.f32.mrb[16].mxu1 }
 0x494   :  { %756 = vst [vmem:[#allocation7 + $0x30] sm:$0xff] %v994_v8  ;;  %v735_v9 = vpop.f32.mrb[17].mxu1 }
 0x495   :  { %754 = vst [vmem:[#allocation7 + $0x20] sm:$0xff] %v735_v9  ;;  %v995_v10 = vpop.f32.mrb[18].mxu1 }
 0x496   :  { %757 = vst [vmem:[#allocation7 + $0x38] sm:$0xff] %v995_v10  ;;  %v738_v11 = vpop.f32.mrb[19].mxu1 }
 0x497   :  { %755 = vst [vmem:[#allocation7 + $0x28] sm:$0xff] %v738_v11 }
 0x498   :  { %1114 = shalt.err (!%p1111_p6)
}
 0x499   :  { %s1115_s12 = scalar_lea.hbm %s1197_s2, 1024 }
 0x49a   :  { %p1116_p7 = scmp.ne.s32.totalorder %s1197_s2, %s1115_s12  ;;  %p1119_p8 = scmp.lt.u32.totalorder %s1115_s12, %s1197_s2 }
 0x49c   :  { %p1121_p9 = pnand %p1119_p8, %p1116_p7 }
 0x49e   :  { %1124 = shalt.err (!%p1121_p9)
}
 0x49f   :  { %769 = dma.vmem_to_hbm [thread:$0]  %s764_s8, 1024, %s1197_s2, [#allocation4], %s1132_s19, %s1132_s19, %s1133_s20  }
 0x4a0   :  { %1129 = dma.done.wait [#allocation4], 1024  }
 0x4a1   :  { %1130 = vsyncadd [#allocation4], 4294966272 }
 0x4a2   :  { %773 = vsyncpa [#allocation3], 1 }
 0x4a3   :  { %774 = vsyncpa [#allocation6], 1 }
 0x4a4   :  { %775 = vsyncpa [#allocation4], 1 }

// kernel: tpu_custom_call.1
= control target key start
LH: loop header
LB: loop body
LE: loop exit
PB: predicated region body
PF: predicated region fallthrough
CT: control target
= control target key end

     0   :  { %7 = vsyncpa [#allocation3], 0  ;;  %s1195_s0 = inlined_call_operand.hbm [shape: f32[64,128], index: 0, kind: input, shape index: {}]   ;;  %s1196_s1 = inlined_call_operand.hbm [shape: bf16[5,128,128], index: 1, kind: input, shape index: {}]   ;;  %s1197_s2 = inlined_call_operand.hbm [shape: f32[64,128], index: 2, kind: output, shape index: {}]  }
   0x1   :  { %8 = vsyncpa [#allocation6], 0 }
   0x2   :  { %9 = vsyncpa [#allocation4], 0  ;;  %s1131_s9 = smov [#allocation2]   ;;  %s1059_s13 = scalar_lea.hbm %s1195_s0, 1024 }
   0x3   :  { %s15_s10 = sshll.u32 %s1131_s9, 4  ;;  %p1060_p0 = scmp.ne.s32.totalorder %s1195_s0, %s1059_s13  ;;  %s16_s10 = int_to_ptr.vmem [resolvable:$true] %s15_s10 }
   0x4   :  { %p1063_p1 = scmp.lt.u32.totalorder %s1059_s13, %s1195_s0 }
   0x6   :  { %p1065_p2 = pnand %p1063_p1, %p1060_p0 }
   0x8   :  { %1068 = shalt.err (!%p1065_p2)
}
   0x9   :  { %s1069_s18 = scalar_lea.vmem %s16_s10, 1024  ;;  %p1074_p4 = scmp.lt.s32.totalorder %s16_s10, %s16_s10 }
   0xa   :  { %p1070_p3 = scmp.ne.s32.totalorder %s16_s10, %s1069_s18  ;;  %p1075_p5 = scmp.lt.s32.totalorder %s1069_s18, %s1069_s18 }
   0xc   :  { %p1076_p6 = por %p1075_p5, %p1074_p4 }
   0xe   :  { %p1077_p7 = pnand %p1076_p6, %p1070_p3 }
  0x10   :  { %1080 = shalt.err (!%p1077_p7)
}
  0x11   :  { %s1132_s19 = smov 128   ;;  %s1133_s20 = smov 8  }
  0x12   :  { %21 = dma.hbm_to_vmem [thread:$0]  %s1195_s0, 1024, %s16_s10, [#allocation3], %s1132_s19, %s1132_s19, %s1133_s20  }
  0x13   :  { %s1134_s23 = smov [#allocation5]   ;;  %s1081_s27 = scalar_lea.hbm %s1196_s1, 5120 }
  0x14   :  { %s27_s24 = sshll.u32 %s1134_s23, 4  ;;  %p1082_p8 = scmp.ne.s32.totalorder %s1196_s1, %s1081_s27  ;;  %s28_s24 = int_to_ptr.vmem [resolvable:$true] %s27_s24 }
  0x15   :  { %p1085_p9 = scmp.lt.u32.totalorder %s1081_s27, %s1196_s1 }
  0x17   :  { %p1087_p10 = pnand %p1085_p9, %p1082_p8 }
  0x19   :  { %1090 = shalt.err (!%p1087_p10)
}
  0x1a   :  { %s1091_s4 = scalar_lea.vmem %s28_s24, 5120  ;;  %p1096_p12 = scmp.lt.s32.totalorder %s28_s24, %s28_s24 }
  0x1b   :  { %p1092_p11 = scmp.ne.s32.totalorder %s28_s24, %s1091_s4  ;;  %p1097_p13 = scmp.lt.s32.totalorder %s1091_s4, %s1091_s4 }
  0x1d   :  { %p1098_p0 = por %p1097_p13, %p1096_p12 }
  0x1f   :  { %p1099_p1 = pnand %p1098_p0, %p1092_p11 }
  0x21   :  { %1102 = shalt.err (!%p1099_p1)
}
  0x22   :  { %s1135_s0 = smov 64   ;;  %s1136_s5 = smov 4  }
  0x23   :  { %33 = dma.hbm_to_vmem [thread:$0]  %s1196_s1, 5120, %s28_s24, [#allocation6], %s1135_s0, %s1135_s0, %s1136_s5  }
  0x24   :  { %1125 = dma.done.wait [#allocation3], 1024  }
  0x25   :  { %1126 = vsyncadd [#allocation3], 4294966272 }
  0x26   :  { %1127 = dma.done.wait [#allocation6], 5120  }
  0x27   :  { %1128 = vsyncadd [#allocation6], 4294962176  ;;  %v1019_v0 = vld [vmem:[#allocation5] sm:$0xff]   ;;  %v1020_v1 = vld [vmem:[#allocation5 + $0x8] sm:$0xff]   ;;  %s1137_s1 = smov [#allocation7]  }
  0x28   :  { %876 = vmatprep.subr.bf16.mxu0 %v1019_v0  ;;  %v1021_v2 = vld [vmem:[#allocation5 + $0x10] sm:$0xff]   ;;  %v1022_v3 = vld [vmem:[#allocation5 + $0x18] sm:$0xff]   ;;  %v41_v4 = vld [vmem:[#allocation2] sm:$0xff]  ;;  %s763_s8 = sshll.u32 %s1137_s1, 4  ;;  %s764_s8 = int_to_ptr.vmem [resolvable:$true] %s763_s8 }
  0x29   :  { %877 = vmatpush3.bf16.msra.mxu0 %v1019_v0  ;;  %v42_v5 = vld [vmem:[#allocation2 + $0x8] sm:$0xff]  ;;  %v1023_v7 = vld [vmem:[#allocation5 + $0x20] sm:$0xff]   ;;  %v1029_v10 = vld [vmem:[#allocation5 + $0x50] sm:$0xff]   ;;  %s1103_s9 = scalar_lea.vmem %s764_s8, 1024  ;;  %p1108_p3 = scmp.lt.s32.totalorder %s764_s8, %s764_s8 }
  0x2a   :  { %878 = vmatprep.subr.bf16.mxu0 %v1020_v1  ;;  %v49_v6 = vpack.c.bf16 %v42_v5, %v41_v4  ;;  %v1027_v8 = vld [vmem:[#allocation5 + $0x40] sm:$0xff]   ;;  %v1028_v9 = vld [vmem:[#allocation5 + $0x48] sm:$0xff]   ;;  %v1030_v12 = vld [vmem:[#allocation5 + $0x58] sm:$0xff]   ;;  %p1104_p2 = scmp.ne.s32.totalorder %s764_s8, %s1103_s9  ;;  %p1109_p4 = scmp.lt.s32.totalorder %s1103_s9, %s1103_s9 }
  0x2b   :  { %900 = vmatprep.subr.bf16.mxu1 %v1027_v8  ;;  %v1024_v11 = vld [vmem:[#allocation5 + $0x28] sm:$0xff]   ;;  %v1025_v13 = vld [vmem:[#allocation5 + $0x30] sm:$0xff]   ;;  %v1031_v14 = vld [vmem:[#allocation5 + $0x60] sm:$0xff]  }
  0x2c   :  { %892 = vmatprep.mubr.bf16.mxu0 %v49_v6  ;;  %901 = vmatpush3.bf16.msra.mxu1 %v1027_v8  ;;  %v1026_v15 = vld [vmem:[#allocation5 + $0x38] sm:$0xff]   ;;  %v43_v16 = vld [vmem:[#allocation2 + $0x10] sm:$0xff]  ;;  %v1032_v18 = vld [vmem:[#allocation5 + $0x68] sm:$0xff]   ;;  %p1110_p5 = por %p1109_p4, %p1108_p3 }
  0x2d   :  { %879 = vmatpush3.bf16.msra.mxu0 %v1020_v1  ;;  %902 = vmatprep.subr.bf16.mxu1 %v1028_v9  ;;  %v44_v17 = vld [vmem:[#allocation2 + $0x18] sm:$0xff]  ;;  %v45_v19 = vld [vmem:[#allocation2 + $0x20] sm:$0xff]  ;;  %v46_v20 = vld [vmem:[#allocation2 + $0x28] sm:$0xff] }
  0x2e   :  { %880 = vmatprep.subr.bf16.mxu0 %v1021_v2  ;;  %v50_v21 = vpack.c.bf16 %v44_v17, %v43_v16  ;;  %v51_v22 = vpack.c.bf16 %v46_v20, %v45_v19  ;;  %v47_v23 = vld [vmem:[#allocation2 + $0x30] sm:$0xff]  ;;  %v48_v24 = vld [vmem:[#allocation2 + $0x38] sm:$0xff]  ;;  %v1035_v28 = vld [vmem:[#allocation5 + $0x80] sm:$0xff]   ;;  %p1111_p6 = pnand %p1110_p5, %p1104_p2 }
  0x2f   :  { %v52_v25 = vpack.c.bf16 %v48_v24, %v47_v23  ;;  %v1033_v26 = vld [vmem:[#allocation5 + $0x70] sm:$0xff]   ;;  %v1034_v27 = vld [vmem:[#allocation5 + $0x78] sm:$0xff]   ;;  %v1036_v29 = vld [vmem:[#allocation5 + $0x88] sm:$0xff]  }
  0x30   :  { %903 = vmatpush3.bf16.msra.mxu1 %v1028_v9  ;;  %v1037_v30 = vld [vmem:[#allocation5 + $0x90] sm:$0xff]   ;;  %v1038_v31 = vld [vmem:[#allocation5 + $0x98] sm:$0xff]   ;;  %v1039_v32 = vld [vmem:[#allocation5 + $0xa0] sm:$0xff]  }
  0x31   :  { %881 = vmatpush3.bf16.msra.mxu0 %v1021_v2  ;;  %904 = vmatprep.subr.bf16.mxu1 %v1029_v10  ;;  %v1040_v33 = vld [vmem:[#allocation5 + $0xa8] sm:$0xff]   ;;  %v1041_v54 = vld [vmem:[#allocation5 + $0xb0] sm:$0xff]   ;;  %v1042_v55 = vld [vmem:[#allocation5 + $0xb8] sm:$0xff]  }
  0x32   :  { %882 = vmatprep.subr.bf16.mxu0 %v1022_v3  ;;  %v1043_v56 = vld [vmem:[#allocation5 + $0xc0] sm:$0xff]   ;;  %v1044_v57 = vld [vmem:[#allocation5 + $0xc8] sm:$0xff]   ;;  %v1045_v58 = vld [vmem:[#allocation5 + $0xd0] sm:$0xff]  }
  0x33   :  { %v1046_v59 = vld [vmem:[#allocation5 + $0xd8] sm:$0xff]   ;;  %v1047_v60 = vld [vmem:[#allocation5 + $0xe0] sm:$0xff]   ;;  %v1048_v61 = vld [vmem:[#allocation5 + $0xe8] sm:$0xff]  }
  0x34   :  { %905 = vmatpush3.bf16.msra.mxu1 %v1029_v10  ;;  %v1050_v19 = vld [vmem:[#allocation5 + $0xf8] sm:$0xff]   ;;  %v1051_v20 = vld [vmem:[#allocation5 + $0x100] sm:$0xff]  }
  0x35   :  { %883 = vmatpush3.bf16.msra.mxu0 %v1022_v3  ;;  %906 = vmatprep.subr.bf16.mxu1 %v1030_v12  ;;  %v1054_v23 = vld [vmem:[#allocation5 + $0x118] sm:$0xff]   ;;  %v1055_v24 = vld [vmem:[#allocation5 + $0x120] sm:$0xff]  }
  0x36   :  { %884 = vmatprep.subr.bf16.mxu0 %v1023_v7 }
  0x38   :  { %907 = vmatpush3.bf16.msra.mxu1 %v1030_v12 }
  0x39   :  { %885 = vmatpush3.bf16.msra.mxu0 %v1023_v7  ;;  %908 = vmatprep.subr.bf16.mxu1 %v1031_v14 }
  0x3a   :  { %886 = vmatprep.subr.bf16.mxu0 %v1024_v11 }
  0x3c   :  { %909 = vmatpush3.bf16.msra.mxu1 %v1031_v14 }
  0x3d   :  { %887 = vmatpush3.bf16.msra.mxu0 %v1024_v11  ;;  %910 = vmatprep.subr.bf16.mxu1 %v1032_v18 }
  0x3e   :  { %888 = vmatprep.subr.bf16.mxu0 %v1025_v13 }
  0x40   :  { %911 = vmatpush3.bf16.msra.mxu1 %v1032_v18  ;;  %v1049_v18 = vld [vmem:[#allocation5 + $0xf0] sm:$0xff]  }
  0x41   :  { %889 = vmatpush3.bf16.msra.mxu0 %v1025_v13  ;;  %912 = vmatprep.subr.bf16.mxu1 %v1033_v26 }
  0x42   :  { %890 = vmatprep.subr.bf16.mxu0 %v1026_v15 }
  0x44   :  { %913 = vmatpush3.bf16.msra.mxu1 %v1033_v26 }
  0x45   :  { %891 = vmatpush3.bf16.msra.mxu0 %v1026_v15  ;;  %914 = vmatprep.subr.bf16.mxu1 %v1034_v27 }
  0x46   :  { %924 = vmatprep.subr.bf16.mxu0 %v1035_v28 }
  0x48   :  { %893 = vmatmul.mubr.bf16.vlgmr.msra.gmra.mrb[0].mxu0 %v50_v21  ;;  %915 = vmatpush3.bf16.msra.mxu1 %v1034_v27  ;;  %v1052_v21 = vld [vmem:[#allocation5 + $0x108] sm:$0xff]  }
  0x49   :  { %896 = vmatprep.mubr.bf16.mxu0 %v51_v22  ;;  %925 = vmatpush3.bf16.msra.mxu0 %v1035_v28  ;;  %v1053_v22 = vld [vmem:[#allocation5 + $0x110] sm:$0xff]  }
  0x4a   :  { %926 = vmatprep.subr.bf16.mxu0 %v1036_v29  ;;  %948 = vmatprep.subr.bf16.mxu1 %v1043_v56 }
  0x4d   :  { %927 = vmatpush3.bf16.msra.mxu0 %v1036_v29 }
  0x4e   :  { %928 = vmatprep.subr.bf16.mxu0 %v1037_v30 }
  0x50   :  { %897 = vmatmul.mubr.bf16.gmra.mrb[4].mxu0 %v52_v25  ;;  %v1056_v25 = vld [vmem:[#allocation5 + $0x128] sm:$0xff]  }
  0x51   :  { %929 = vmatpush3.bf16.msra.mxu0 %v1037_v30 }
  0x52   :  { %930 = vmatprep.subr.bf16.mxu0 %v1038_v31 }
  0x55   :  { %931 = vmatpush3.bf16.msra.mxu0 %v1038_v31 }
  0x56   :  { %932 = vmatprep.subr.bf16.mxu0 %v1039_v32 }
  0x59   :  { %933 = vmatpush3.bf16.msra.mxu0 %v1039_v32 }
  0x5a   :  { %934 = vmatprep.subr.bf16.mxu0 %v1040_v33 }
  0x5d   :  { %935 = vmatpush3.bf16.msra.mxu0 %v1040_v33 }
  0x5e   :  { %936 = vmatprep.subr.bf16.mxu0 %v1041_v54 }
  0x61   :  { %937 = vmatpush3.bf16.msra.mxu0 %v1041_v54 }
  0x62   :  { %938 = vmatprep.subr.bf16.mxu0 %v1042_v55 }
  0x65   :  { %939 = vmatpush3.bf16.msra.mxu0 %v1042_v55 }
  0x66   :  { %972 = vmatprep.subr.bf16.mxu0 %v1051_v20 }
 0x11b   :  { %v894_v34 = vpop.f32.mrb[0].mxu0 }
 0x11c   :  { %v151_v35 = vpop.f32.mrb[1].mxu0  ;;  %v184_v37 = vmax.f32 %v894_v34, 0.0 }
 0x11d   :  { %v895_v36 = vpop.f32.mrb[2].mxu0  ;;  %v182_v40 = vmax.f32 %v151_v35, 0.0 }
 0x11e   :  { %v185_v38 = vmax.f32 %v895_v36, 0.0  ;;  %v154_v39 = vpop.f32.mrb[3].mxu0 }
 0x11f   :  { %v183_v41 = vmax.f32 %v154_v39, 0.0 }
 0x120   :  { %v191_v42 = vpack.c.bf16 %v185_v38, %v184_v37 }
 0x121   :  { %v190_v43 = vpack.c.bf16 %v183_v41, %v182_v40 }
 0x123   :  { %v898_v44 = vpop.f32.mrb[4].mxu0  ;;  %916 = vmatprep.mubr.bf16.mxu1 %v190_v43 }
 0x124   :  { %v167_v45 = vpop.f32.mrb[5].mxu0  ;;  %917 = vmatmul.mubr.bf16.vlgmr.msra.gmra.mrb[0].mxu1 %v191_v42  ;;  %v188_v47 = vmax.f32 %v898_v44, 0.0 }
 0x125   :  { %v899_v46 = vpop.f32.mrb[6].mxu0  ;;  %v186_v50 = vmax.f32 %v167_v45, 0.0  ;;  %949 = vmatpush3.bf16.msra.mxu1 %v1043_v56 }
 0x126   :  { %v189_v48 = vmax.f32 %v899_v46, 0.0  ;;  %v170_v49 = vpop.f32.mrb[7].mxu0  ;;  %950 = vmatprep.subr.bf16.mxu1 %v1044_v57  ;;  %v1057_v46 = vld [vmem:[#allocation5 + $0x130] sm:$0xff]  }
 0x127   :  { %v187_v51 = vmax.f32 %v170_v49, 0.0 }
 0x128   :  { %v193_v52 = vpack.c.bf16 %v189_v48, %v188_v47  ;;  %v1058_v47 = vld [vmem:[#allocation5 + $0x138] sm:$0xff]  }
 0x129   :  { %v192_v53 = vpack.c.bf16 %v187_v51, %v186_v50  ;;  %951 = vmatpush3.bf16.msra.mxu1 %v1044_v57 }
 0x12a   :  { %952 = vmatprep.subr.bf16.mxu1 %v1045_v58 }
 0x12b   :  { %920 = vmatprep.mubr.bf16.mxu1 %v192_v53 }
 0x12c   :  { %921 = vmatmul.mubr.bf16.gmra.mrb[4].mxu1 %v193_v52 }
 0x12d   :  { %953 = vmatpush3.bf16.msra.mxu1 %v1045_v58 }
 0x12e   :  { %954 = vmatprep.subr.bf16.mxu1 %v1046_v59 }
 0x131   :  { %955 = vmatpush3.bf16.msra.mxu1 %v1046_v59 }
 0x132   :  { %956 = vmatprep.subr.bf16.mxu1 %v1047_v60 }
 0x135   :  { %957 = vmatpush3.bf16.msra.mxu1 %v1047_v60 }
 0x136   :  { %958 = vmatprep.subr.bf16.mxu1 %v1048_v61 }
 0x139   :  { %959 = vmatpush3.bf16.msra.mxu1 %v1048_v61 }
 0x13a   :  { %960 = vmatprep.subr.bf16.mxu1 %v1049_v18 }
 0x13d   :  { %961 = vmatpush3.bf16.msra.mxu1 %v1049_v18 }
 0x13e   :  { %962 = vmatprep.subr.bf16.mxu1 %v1050_v19 }
 0x141   :  { %963 = vmatpush3.bf16.msra.mxu1 %v1050_v19 }
 0x142   :  { %996 = vmatprep.subr.bf16.mxu1 %v1051_v20 }
 0x1f7   :  { %v918_v62 = vpop.f32.mrb[0].mxu1 }
 0x1f8   :  { %v293_v63 = vpop.f32.mrb[1].mxu1  ;;  %v326_v1 = vmax.f32 %v918_v62, 0.0 }
 0x1f9   :  { %v919_v0 = vpop.f32.mrb[2].mxu1  ;;  %v324_v4 = vmax.f32 %v293_v63, 0.0 }
 0x1fa   :  { %v327_v2 = vmax.f32 %v919_v0, 0.0  ;;  %v296_v3 = vpop.f32.mrb[3].mxu1 }
 0x1fb   :  { %v325_v5 = vmax.f32 %v296_v3, 0.0 }
 0x1fc   :  { %v333_v6 = vpack.c.bf16 %v327_v2, %v326_v1 }
 0x1fd   :  { %v332_v7 = vpack.c.bf16 %v325_v5, %v324_v4 }
 0x1ff   :  { %v922_v8 = vpop.f32.mrb[4].mxu1  ;;  %940 = vmatprep.mubr.bf16.mxu0 %v332_v7 }
 0x200   :  { %v309_v9 = vpop.f32.mrb[5].mxu1  ;;  %941 = vmatmul.mubr.bf16.vlgmr.msra.gmra.mrb[8].mxu0 %v333_v6  ;;  %v330_v11 = vmax.f32 %v922_v8, 0.0 }
 0x201   :  { %v923_v10 = vpop.f32.mrb[6].mxu1  ;;  %v328_v14 = vmax.f32 %v309_v9, 0.0  ;;  %973 = vmatpush3.bf16.msra.mxu0 %v1051_v20 }
 0x202   :  { %v331_v12 = vmax.f32 %v923_v10, 0.0  ;;  %v312_v13 = vpop.f32.mrb[7].mxu1  ;;  %974 = vmatprep.subr.bf16.mxu0 %v1052_v21 }
 0x203   :  { %v329_v15 = vmax.f32 %v312_v13, 0.0 }
 0x204   :  { %v335_v16 = vpack.c.bf16 %v331_v12, %v330_v11 }
 0x205   :  { %v334_v17 = vpack.c.bf16 %v329_v15, %v328_v14  ;;  %975 = vmatpush3.bf16.msra.mxu0 %v1052_v21 }
 0x206   :  { %976 = vmatprep.subr.bf16.mxu0 %v1053_v22 }
 0x207   :  { %944 = vmatprep.mubr.bf16.mxu0 %v334_v17 }
 0x208   :  { %945 = vmatmul.mubr.bf16.gmra.mrb[12].mxu0 %v335_v16 }
 0x209   :  { %977 = vmatpush3.bf16.msra.mxu0 %v1053_v22 }
 0x20a   :  { %978 = vmatprep.subr.bf16.mxu0 %v1054_v23 }
 0x20d   :  { %979 = vmatpush3.bf16.msra.mxu0 %v1054_v23 }
 0x20e   :  { %980 = vmatprep.subr.bf16.mxu0 %v1055_v24 }
 0x211   :  { %981 = vmatpush3.bf16.msra.mxu0 %v1055_v24 }
 0x212   :  { %982 = vmatprep.subr.bf16.mxu0 %v1056_v25 }
 0x215   :  { %983 = vmatpush3.bf16.msra.mxu0 %v1056_v25 }
 0x216   :  { %984 = vmatprep.subr.bf16.mxu0 %v1057_v46 }
 0x219   :  { %985 = vmatpush3.bf16.msra.mxu0 %v1057_v46 }
 0x21a   :  { %986 = vmatprep.subr.bf16.mxu0 %v1058_v47 }
 0x21d   :  { %987 = vmatpush3.bf16.msra.mxu0 %v1058_v47 }
 0x2d3   :  { %v942_v26 = vpop.f32.mrb[8].mxu0 }
 0x2d4   :  { %v435_v27 = vpop.f32.mrb[9].mxu0  ;;  %v468_v29 = vmax.f32 %v942_v26, 0.0 }
 0x2d5   :  { %v943_v28 = vpop.f32.mrb[10].mxu0  ;;  %v466_v32 = vmax.f32 %v435_v27, 0.0 }
 0x2d6   :  { %v469_v30 = vmax.f32 %v943_v28, 0.0  ;;  %v438_v31 = vpop.f32.mrb[11].mxu0 }
 0x2d7   :  { %v467_v33 = vmax.f32 %v438_v31, 0.0 }
 0x2d8   :  { %v475_v34 = vpack.c.bf16 %v469_v30, %v468_v29 }
 0x2d9   :  { %v474_v35 = vpack.c.bf16 %v467_v33, %v466_v32 }
 0x2db   :  { %v946_v36 = vpop.f32.mrb[12].mxu0  ;;  %964 = vmatprep.mubr.bf16.mxu1 %v474_v35 }
 0x2dc   :  { %v451_v37 = vpop.f32.mrb[13].mxu0  ;;  %965 = vmatmul.mubr.bf16.vlgmr.msra.gmra.mrb[8].mxu1 %v475_v34  ;;  %v472_v39 = vmax.f32 %v946_v36, 0.0 }
 0x2dd   :  { %v947_v38 = vpop.f32.mrb[14].mxu0  ;;  %1004 = vmatpush3.bf16.msra.mxu1 %v1051_v20  ;;  %v470_v42 = vmax.f32 %v451_v37, 0.0 }
 0x2de   :  { %v473_v40 = vmax.f32 %v947_v38, 0.0  ;;  %v454_v41 = vpop.f32.mrb[15].mxu0  ;;  %997 = vmatprep.subr.bf16.mxu1 %v1052_v21 }
 0x2df   :  { %v471_v43 = vmax.f32 %v454_v41, 0.0 }
 0x2e0   :  { %v477_v44 = vpack.c.bf16 %v473_v40, %v472_v39 }
 0x2e1   :  { %v476_v45 = vpack.c.bf16 %v471_v43, %v470_v42  ;;  %1005 = vmatpush3.bf16.msra.mxu1 %v1052_v21 }
 0x2e2   :  { %998 = vmatprep.subr.bf16.mxu1 %v1053_v22 }
 0x2e3   :  { %968 = vmatprep.mubr.bf16.mxu1 %v476_v45 }
 0x2e4   :  { %969 = vmatmul.mubr.bf16.gmra.mrb[12].mxu1 %v477_v44 }
 0x2e5   :  { %1006 = vmatpush3.bf16.msra.mxu1 %v1053_v22 }
 0x2e6   :  { %999 = vmatprep.subr.bf16.mxu1 %v1054_v23 }
 0x2e9   :  { %1007 = vmatpush3.bf16.msra.mxu1 %v1054_v23 }
 0x2ea   :  { %1000 = vmatprep.subr.bf16.mxu1 %v1055_v24 }
 0x2ed   :  { %1008 = vmatpush3.bf16.msra.mxu1 %v1055_v24 }
 0x2ee   :  { %1001 = vmatprep.subr.bf16.mxu1 %v1056_v25 }
 0x2f1   :  { %1009 = vmatpush3.bf16.msra.mxu1 %v1056_v25 }
 0x2f2   :  { %1002 = vmatprep.subr.bf16.mxu1 %v1057_v46 }
 0x2f5   :  { %1010 = vmatpush3.bf16.msra.mxu1 %v1057_v46 }
 0x2f6   :  { %1003 = vmatprep.subr.bf16.mxu1 %v1058_v47 }
 0x2f9   :  { %1011 = vmatpush3.bf16.msra.mxu1 %v1058_v47 }
 0x3af   :  { %v966_v48 = vpop.f32.mrb[8].mxu1 }
 0x3b0   :  { %v577_v49 = vpop.f32.mrb[9].mxu1  ;;  %v610_v51 = vmax.f32 %v966_v48, 0.0 }
 0x3b1   :  { %v967_v50 = vpop.f32.mrb[10].mxu1  ;;  %v608_v54 = vmax.f32 %v577_v49, 0.0 }
 0x3b2   :  { %v611_v52 = vmax.f32 %v967_v50, 0.0  ;;  %v580_v53 = vpop.f32.mrb[11].mxu1 }
 0x3b3   :  { %v609_v55 = vmax.f32 %v580_v53, 0.0 }
 0x3b4   :  { %v617_v56 = vpack.c.bf16 %v611_v52, %v610_v51 }
 0x3b5   :  { %v616_v57 = vpack.c.bf16 %v609_v55, %v608_v54 }
 0x3b7   :  { %v970_v58 = vpop.f32.mrb[12].mxu1  ;;  %988 = vmatprep.mubr.bf16.mxu0 %v616_v57 }
 0x3b8   :  { %v593_v59 = vpop.f32.mrb[13].mxu1  ;;  %989 = vmatmul.mubr.bf16.vlgmr.msra.gmra.mrb[16].mxu0 %v617_v56  ;;  %v614_v61 = vmax.f32 %v970_v58, 0.0 }
 0x3b9   :  { %v971_v60 = vpop.f32.mrb[14].mxu1  ;;  %v612_v0 = vmax.f32 %v593_v59, 0.0 }
 0x3ba   :  { %v615_v62 = vmax.f32 %v971_v60, 0.0  ;;  %v596_v63 = vpop.f32.mrb[15].mxu1 }
 0x3bb   :  { %v613_v1 = vmax.f32 %v596_v63, 0.0 }
 0x3bc   :  { %v619_v2 = vpack.c.bf16 %v615_v62, %v614_v61 }
 0x3bd   :  { %v618_v3 = vpack.c.bf16 %v613_v1, %v612_v0 }
 0x3bf   :  { %992 = vmatprep.mubr.bf16.mxu1 %v618_v3 }
 0x3c0   :  { %993 = vmatmul.mubr.bf16.vlgmr.msra.gmra.mrb[16].mxu1 %v619_v2 }
 0x48b   :  { %v990_v4 = vpop.f32.mrb[16].mxu0 }
 0x48c   :  { %752 = vst [vmem:[#allocation7 + $0x10] sm:$0xff] %v990_v4  ;;  %v719_v5 = vpop.f32.mrb[17].mxu0 }
 0x48d   :  { %750 = vst [vmem:[#allocation7] sm:$0xff] %v719_v5  ;;  %v991_v6 = vpop.f32.mrb[18].mxu0 }
 0x48e   :  { %753 = vst [vmem:[#allocation7 + $0x18] sm:$0xff] %v991_v6  ;;  %v722_v7 = vpop.f32.mrb[19].mxu0 }
 0x48f   :  { %751 = vst [vmem:[#allocation7 + $0x8] sm:$0xff] %v722_v7 }
 0x493   :  { %v994_v8 = vpop.f32.mrb[16].mxu1 }
 0x494   :  { %756 = vst [vmem:[#allocation7 + $0x30] sm:$0xff] %v994_v8  ;;  %v735_v9 = vpop.f32.mrb[17].mxu1 }
 0x495   :  { %754 = vst [vmem:[#allocation7 + $0x20] sm:$0xff] %v735_v9  ;;  %v995_v10 = vpop.f32.mrb[18].mxu1 }
 0x496   :  { %757 = vst [vmem:[#allocation7 + $0x38] sm:$0xff] %v995_v10  ;;  %v738_v11 = vpop.f32.mrb[19].mxu1 }
 0x497   :  { %755 = vst [vmem:[#allocation7 + $0x28] sm:$0xff] %v738_v11 }
 0x498   :  { %1114 = shalt.err (!%p1111_p6)
}
 0x499   :  { %s1115_s12 = scalar_lea.hbm %s1197_s2, 1024 }
 0x49a   :  { %p1116_p7 = scmp.ne.s32.totalorder %s1197_s2, %s1115_s12  ;;  %p1119_p8 = scmp.lt.u32.totalorder %s1115_s12, %s1197_s2 }
 0x49c   :  { %p1121_p9 = pnand %p1119_p8, %p1116_p7 }
 0x49e   :  { %1124 = shalt.err (!%p1121_p9)
}
 0x49f   :  { %769 = dma.vmem_to_hbm [thread:$0]  %s764_s8, 1024, %s1197_s2, [#allocation4], %s1132_s19, %s1132_s19, %s1133_s20  }
 0x4a0   :  { %1129 = dma.done.wait [#allocation4], 1024  }
 0x4a1   :  { %1130 = vsyncadd [#allocation4], 4294966272 }
 0x4a2   :  { %773 = vsyncpa [#allocation3], 1 }
 0x4a3   :  { %774 = vsyncpa [#allocation6], 1 }
 0x4a4   :  { %775 = vsyncpa [#allocation4], 1 }

</bundles_post_ra>
